<compile_context>
chip_gen: v7x
topology: tpu7x:2x2x1
jax: 0.10.0
libtpu: 0.0.40
codegen_flags: <defaults>
</compile_context>

<pallas_src>
import types
from functools import partial

import numpy as np
import jax
import jax.numpy as jnp
from jax.experimental import pallas as pl
from jax.experimental.pallas import tpu as pltpu


# ----------------------------------------------------------------------------
# Pallas kernel factory: fused invert -> brightness -> contrast -> noise ->
# normalize over a (D, L) lane-dense slab held entirely in VMEM.
# Branch decisions are trace-time Python bools, so disabled stages emit no code.
# ----------------------------------------------------------------------------
def _make_augment_kernel(*, do_invert, do_bright, do_contrast, do_noise,
                         depth, lane_valid, lane_total):
    needs_mask = lane_valid != lane_total
    n = depth * lane_valid

    def kernel(*refs):
        # refs = (params_ref, img_ref, [noise_ref,] out_ref)
        params_ref = refs[0]          # SMEM f32[2] = [bright_val, contrast_val]
        img_ref = refs[1]             # VMEM f32[D, L_pad]
        noise_ref = refs[2] if do_noise else None
        out_ref = refs[-1]

        x = img_ref[...].astype(jnp.float32)

        if needs_mask:
            lane = jax.lax.broadcasted_iota(jnp.int32, x.shape, 1)
            valid = lane < lane_valid

        # _invert : image.sub_(255).mul_(-1)  ==  255 - x
        if do_invert:
            x = 255.0 - x

        # _brightness : (x + val).clamp(0, 255)
        if do_bright:
            x = jnp.clip(x + params_ref[0], 0.0, 255.0)

        # _contrast : x/255 -> torchvision adjust_contrast on (D, C, H, W) batch
        #             (blend each depth slice with its own mean, clamp [0,1]) -> *255
        # NOTE: matches torchvision exactly for C == 1 (no grayscale conversion needed).
        if do_contrast:
            ct = params_ref[1]
            xs = x * (1.0 / 255.0)
            if needs_mask:
                smean = (jnp.sum(jnp.where(valid, xs, 0.0), axis=1, keepdims=True)
                         * (1.0 / lane_valid))
            else:
                smean = jnp.mean(xs, axis=1, keepdims=True)
            x = jnp.clip(ct * xs + (1.0 - ct) * smean, 0.0, 1.0) * 255.0

        # _noise : x + U[0, NOISE_GAMMA)  (noise pre-scaled in the jitted wrapper;
        #          kernel-side hardware PRNG has no interpret-mode lowering).
        if do_noise:
            x = x + noise_ref[...]

        # _normalize : (x - mean) / std, torch-style unbiased std (N-1).
        # Single sweep: sum + sum-of-squares, then rsqrt on the epilogue.
        xm = jnp.where(valid, x, 0.0) if needs_mask else x
        s = jnp.sum(xm)
        ss = jnp.sum(xm * xm)
        mean = s * (1.0 / n)
        var = (ss - s * mean) * (1.0 / (n - 1))
        out_ref[...] = (x - mean) * jax.lax.rsqrt(var)

    return kernel


def _augment_pallas(slab, params, noise, *, do_invert, do_bright, do_contrast,
                    do_noise, lane_valid):
    depth, lane_total = slab.shape
    kernel = _make_augment_kernel(
        do_invert=do_invert, do_bright=do_bright, do_contrast=do_contrast,
        do_noise=do_noise, depth=depth, lane_valid=lane_valid,
        lane_total=lane_total)

    in_specs = [
        pl.BlockSpec(memory_space=pltpu.MemorySpace.SMEM),   # scalar params
        pl.BlockSpec(memory_space=pltpu.MemorySpace.VMEM),   # image slab
    ]
    args = [params, slab]
    if do_noise:
        in_specs.append(pl.BlockSpec(memory_space=pltpu.MemorySpace.VMEM))
        args.append(noise)

    # TODO(synk): for crop volumes that outgrow VMEM (esp. v7x 64 MiB), switch to a
    # gridded two-pass version (parallel leading axis, VMEM scratch accumulators).
    return pl.pallas_call(
        kernel,
        out_shape=jax.ShapeDtypeStruct((depth, lane_total), jnp.float32),
        in_specs=in_specs,
        out_specs=pl.BlockSpec(memory_space=pltpu.MemorySpace.VMEM),
    )(*args)


# ----------------------------------------------------------------------------
# Jitted wrapper: crop + flips + layout + noise generation + pallas kernel, all in
# one XLA program.  Flags are static args -> one cached variant per branch combo.
# ----------------------------------------------------------------------------
@partial(jax.jit, static_argnames=(
    "crop_h", "crop_w", "flip_x", "flip_y",
    "do_invert", "do_bright", "do_contrast", "do_noise"))
def _augment_jit(image, x0, y0, noise_key, bright_val, contrast_val, noise_gamma,
                 *, crop_h, crop_w, flip_x, flip_y,
                 do_invert, do_bright, do_contrast, do_noise):
    C, H, W, D = image.shape
    # TODO(synk): lax.dynamic_slice clamps out-of-range starts; PyTorch slicing does not.
    img = jax.lax.dynamic_slice(image, (0, y0, x0, 0), (C, crop_h, crop_w, D))

    # flips (pure layout) get fused by XLA into the single transpose/copy below
    if flip_x:                       # _flipX flips the H axis
        img = img[:, ::-1, :, :]
    if flip_y:                       # _flipY flips the W axis
        img = img[:, :, ::-1, :]

    L = C * crop_h * crop_w
    slab = jnp.transpose(img, (3, 0, 1, 2)).reshape(D, L).astype(jnp.float32)
    L_pad = ((L + 127) // 128) * 128        # keep the lane axis a multiple of 128
    if L_pad != L:
        slab = jnp.pad(slab, ((0, 0), (0, L_pad - L)))

    # Noise pre-scaled to [0, NOISE_GAMMA): XLA fuses the scale into the RNG epilogue.
    noise = (jax.random.uniform(noise_key, (D, L_pad), jnp.float32,
                                maxval=noise_gamma)
             if do_noise else None)
    params = jnp.stack([bright_val, contrast_val]).astype(jnp.float32)

    out = _augment_pallas(slab, params, noise,
                          do_invert=do_invert, do_bright=do_bright,
                          do_contrast=do_contrast, do_noise=do_noise,
                          lane_valid=L)
    out = out[:, :L]
    return jnp.transpose(out.reshape(D, C, crop_h, crop_w), (1, 2, 3, 0))


# ----------------------------------------------------------------------------
# Host-side glue reproducing TransformFromCfg.forward()
# ----------------------------------------------------------------------------
def make_cfg():
    aug = types.SimpleNamespace(
        CROP_WIDTH=16, CROP_HEIGHT=16, CROP_DEPTH=8,
        FLIP_RATE=0.5,
        BRIGHTNESS_RATE=0.5, BRIGHTNESS_RANGE=(-20.0, 20.0),
        NOISE_GAMMA=10.0, NOISE_RATE=0.5,
        CONTRAST_RATE=0.5, CONTRAST_RANGE=(0.75, 1.25),
        AFFINE_RATE=0.0, AFFINE_SCALE=(1.0, 1.0),
        AFFINE_SHEAR=(0.0, 0.0), AFFINE_YAW=(0.0, 0.0),
    )
    return types.SimpleNamespace(AUGMENTATION=aug)


def transform_forward(data_dict, cfg, key):
    A = cfg.AUGMENTATION
    image = data_dict["image"]                                 # (C, H, W, D) float32
    boxes = np.asarray(data_dict["boxes"], dtype=np.float32)   # one transfer; tiny
    labels = np.asarray(data_dict["labels"])                   # one transfer; tiny

    k_u, k_noise = jax.random.split(key)
    # Single batched device->host pull of every random decision (was ~10 blocking syncs).
    u = np.asarray(jax.random.uniform(k_u, (10,), jnp.float32))

    w, h = int(A.CROP_WIDTH), int(A.CROP_HEIGHT)

    # ---- _crop1 (host side: data-dependent box selection + dynamic-shape filtering) --
    n_boxes = boxes.shape[0]
    ind = min(int(u[0] * n_boxes), n_boxes - 1)
    box = boxes[ind]
    x0 = int(box[0]) - w // 2
    y0 = int(box[1]) - h // 2
    x1, y1 = x0 + w, y0 + h

    keep = np.logical_and(
        np.logical_and(boxes[:, 0] < x1, boxes[:, 2] > x0),
        np.logical_and(boxes[:, 1] < y1, boxes[:, 3] > y0))
    # TODO(synk): dynamic-shape boolean filtering has no Pallas equivalent; done host-side.
    boxes = boxes[keep].copy()
    labels = labels[keep].copy()
    boxes[:, [0, 2]] -= x0
    boxes[:, [1, 3]] -= y0
    boxes[:, [0, 2]] = np.clip(boxes[:, [0, 2]], 0, w)
    boxes[:, [1, 3]] = np.clip(boxes[:, [1, 3]], 0, h)

    # ---- random branch decisions (host bools -> trace-time kernel specialization) ----
    flip_x = bool(u[1] < A.FLIP_RATE)
    flip_y = bool(u[2] < A.FLIP_RATE)
    _ = float(u[3])  # draw consumed for _flipZ
    # TODO(synk): _flipZ is referenced in forward() but not defined in the source module.
    do_invert = bool(u[4] < A.BRIGHTNESS_RATE)   # reference gates invert on BRIGHTNESS_RATE
    do_bright = bool(u[5] < A.BRIGHTNESS_RATE)
    blo, bhi = A.BRIGHTNESS_RANGE
    bright_val = float(blo + (bhi - blo) * u[6])
    do_contrast = bool(u[7] < A.CONTRAST_RATE)
    clo, chi = A.CONTRAST_RANGE
    contrast_val = float(clo + (chi - clo) * u[8])
    do_noise = bool(u[9] < A.NOISE_RATE)

    # ---- box updates for the flips.  Mirrors the reference exactly, including its use
    #      of image.shape[2] (W) for the y-coords in _flipX and image.shape[1] (H) for
    #      the x-coords in _flipY -- exact for square crops, as in the reference. ------
    if flip_x:
        b1, b3 = boxes[:, 1].copy(), boxes[:, 3].copy()
        boxes[:, 3] = w - b1          # image.shape[2] == W after crop
        boxes[:, 1] = w - b3
    if flip_y:
        b0, b2 = boxes[:, 0].copy(), boxes[:, 2].copy()
        boxes[:, 2] = h - b0          # image.shape[1] == H after crop
        boxes[:, 0] = h - b2

    image_out = _augment_jit(
        image, x0, y0, k_noise, bright_val, contrast_val, float(A.NOISE_GAMMA),
        crop_h=h, crop_w=w, flip_x=flip_x, flip_y=flip_y,
        do_invert=do_invert, do_bright=do_bright,
        do_contrast=do_contrast, do_noise=do_noise)

    out = dict(data_dict)
    out["image"] = image_out
    out["boxes"] = jnp.asarray(boxes)
    out["labels"] = jnp.asarray(labels)
    return out


# ----------------------------------------------------------------------------
if __name__ == "__main__":
    cfg = make_cfg()
    key = jax.random.PRNGKey(0)
    k_img, k_fwd = jax.random.split(key)

    C, H, W, D = 1, 32, 32, 8
    image = jax.random.uniform(k_img, (C, H, W, D), jnp.float32) * 255.0
    boxes = jnp.asarray([[10.0, 10.0, 20.0, 20.0],
                         [12.0, 14.0, 22.0, 24.0],
                         [9.0, 11.0, 17.0, 19.0]], dtype=jnp.float32)
    labels = jnp.asarray([1, 2, 3], dtype=jnp.int32)
    masks = jnp.zeros((C, H, W, D), jnp.float32)

    data = {"image": image, "boxes": boxes, "labels": labels, "masks": masks}
    out = transform_forward(data, cfg, k_fwd)
    jax.block_until_ready(out["image"])

    img = out["image"]
    assert img.shape == (C, cfg.AUGMENTATION.CROP_HEIGHT, cfg.AUGMENTATION.CROP_WIDTH, D)
    assert bool(jnp.all(jnp.isfinite(img)))
    print("KERNEL_OK")
</pallas_src>

<mosaic_0001>
module attributes {stable_mosaic.version = 11 : i64} {
  func.func @kernel(%arg0: memref<2xf32, #tpu.memory_space<smem>>, %arg1: memref<8x256xf32, #tpu.memory_space<vmem>>, %arg2: memref<8x256xf32, #tpu.memory_space<vmem>>) attributes {dimension_semantics = [], scalar_prefetch = 0 : i64, scratch_operands = 0 : i64, tpu.core_type = #tpu.core_type<tc>} {
    %c0 = arith.constant 0 : index
    %c0_0 = arith.constant 0 : index
    %0 = vector.load %arg1[%c0, %c0_0] : memref<8x256xf32, #tpu.memory_space<vmem>>, vector<8x256xf32>
    %cst = arith.constant 2.550000e+02 : f32
    %1 = vector.broadcast %cst : f32 to vector<8x256xf32>
    %2 = arith.subf %1, %0 : vector<8x256xf32>
    %3 = vector.shape_cast %2 : vector<8x256xf32> to vector<1x8x256xf32>
    %cst_1 = arith.constant dense<0.000000e+00> : vector<1xf32>
    %4 = vector.multi_reduction <add>, %3, %cst_1 [1, 2] : vector<1x8x256xf32> to vector<1xf32>
    %5 = vector.shape_cast %4 : vector<1xf32> to vector<1x1x1xf32>
    %6 = vector.extract %5[0, 0, 0] : f32 from vector<1x1x1xf32>
    %7 = arith.mulf %2, %2 : vector<8x256xf32>
    %8 = vector.shape_cast %7 : vector<8x256xf32> to vector<1x8x256xf32>
    %cst_2 = arith.constant dense<0.000000e+00> : vector<1xf32>
    %9 = vector.multi_reduction <add>, %8, %cst_2 [1, 2] : vector<1x8x256xf32> to vector<1xf32>
    %10 = vector.shape_cast %9 : vector<1xf32> to vector<1x1x1xf32>
    %11 = vector.extract %10[0, 0, 0] : f32 from vector<1x1x1xf32>
    %cst_3 = arith.constant 4.8828125E-4 : f32
    %12 = arith.mulf %6, %cst_3 : f32
    %13 = arith.mulf %6, %12 : f32
    %14 = arith.subf %11, %13 : f32
    %cst_4 = arith.constant 4.88519785E-4 : f32
    %15 = arith.mulf %14, %cst_4 : f32
    %16 = vector.broadcast %12 : f32 to vector<8x256xf32>
    %17 = arith.subf %2, %16 : vector<8x256xf32>
    %18 = math.rsqrt %15 : f32
    %19 = vector.broadcast %18 : f32 to vector<8x256xf32>
    %20 = arith.mulf %17, %19 : vector<8x256xf32>
    %c0_5 = arith.constant 0 : index
    %c0_6 = arith.constant 0 : index
    %21 = vector.load %arg2[%c0_5, %c0_6] : memref<8x256xf32, #tpu.memory_space<vmem>>, vector<8x256xf32>
    tpu.vector_store %arg2[%c0_5, %c0_6], %20 {strides = array<i32>} : memref<8x256xf32, #tpu.memory_space<vmem>>, vector<8x256xf32>,
    return
  }
}

</mosaic_0001>

<bundles_post_ra>
// kernel: _augment_jit.1
= control target key start
LH: loop header
LB: loop body
LE: loop exit
PB: predicated region body
PF: predicated region fallthrough
CT: control target
= control target key end

     0   :  { %7 = vsyncpa [#allocation3], 0  ;;  %s124_s0 = inlined_call_operand.vmem [shape: f32[2], index: 0, kind: input, shape index: {}]   ;;  %s125_s1 = inlined_call_operand.vmem [shape: f32[8,256], index: 1, kind: input, shape index: {}]   ;;  %s126_s2 = inlined_call_operand.vmem [shape: f32[8,256], index: 2, kind: output, shape index: {}]  }
   0x1   :  { %s14_s11 = sshll.u32 %s124_s0, 4  ;;  %s15_s11 = int_to_ptr.vmem [resolvable:$true] %s14_s11 }
   0x2   :  { %s79_s12 = scalar_lea.vmem %s15_s11, 16  ;;  %p84_p1 = scmp.lt.s32.totalorder %s15_s11, %s15_s11 }
   0x3   :  { %p80_p0 = scmp.ne.s32.totalorder %s15_s11, %s79_s12  ;;  %p85_p2 = scmp.lt.s32.totalorder %s79_s12, %s79_s12 }
   0x5   :  { %p86_p3 = por %p85_p2, %p84_p1 }
   0x7   :  { %p87_p4 = pnand %p86_p3, %p80_p0 }
   0x9   :  { %90 = shalt.err (!%p87_p4)
}
   0xa   :  { %s93_s13 = smov [#allocation2]  }
   0xb   :  { %17 = dma.vmem_to_smem %s15_s11, 16, %s93_s13, [#allocation3]  }
   0xc   :  { %91 = dma.done.wait [#allocation3], 16  }
   0xd   :  { %92 = vsyncadd [#allocation3], 4294967280 }
   0xe   :  { %23 = sfence }
   0xf   :  { %v24_v0 = vld [vmem:[%s125_s1] sm:$0xff]  ;;  %v25_v1 = vld [vmem:[%s125_s1 + $0x8] sm:$0xff] }
  0x10   :  { %v26_v2 = vsub.f32 255.0, %v24_v0  ;;  %v27_v3 = vsub.f32 255.0, %v25_v1 }
  0x12   :  { %v28_v4 = vadd.f32 %v27_v3, %v26_v2  ;;  %v38_v5 = vmul.f32 %v26_v2, %v26_v2  ;;  %v39_v6 = vmul.f32 %v27_v3, %v27_v3 }
  0x14   :  { %29 = vadd.xlane.f32.xlu0 %v28_v4  ;;  %v40_v7 = vadd.f32 %v39_v6, %v38_v5 }
  0x18   :  { %41 = vadd.xlane.f32.xlu0 %v40_v7 }
  0xa1   :  { %v30_v8 = vpop.xlane.xlu0 %29 }
  0xa2   :  { %v31_v9 = vrot.slane %v30_v8, 4 }
  0xa4   :  { %v32_v10 = vadd.f32 %v31_v9, %v30_v8 }
  0xa5   :  { %v42_v11 = vpop.xlane.xlu0 %41 }
  0xa6   :  { %v33_v12 = vrot.slane %v32_v10, 2  ;;  %v43_v13 = vrot.slane %v42_v11, 4 }
  0xa8   :  { %v44_v14 = vadd.f32 %v43_v13, %v42_v11  ;;  %v34_v15 = vadd.f32 %v33_v12, %v32_v10 }
  0xaa   :  { %v45_v16 = vrot.slane %v44_v14, 2  ;;  %v35_v17 = vrot.slane %v34_v15, 1 }
  0xac   :  { %v46_v18 = vadd.f32 %v45_v16, %v44_v14  ;;  %v36_v19 = vadd.f32 %v35_v17, %v34_v15 }
  0xae   :  { %70 = vpush %v36_v19  ;;  %v47_v20 = vrot.slane %v46_v18, 1 }
  0xb0   :  { %v48_v21 = vadd.f32 %v47_v20, %v46_v18 }
  0xb2   :  { %72 = vpush %v48_v21 }
  0xdf   :  { %s71_s0 = spop %70 }
  0xe0   :  { %s50_s1 = smul.f32 0.00048828125, %s71_s0 }
  0xe2   :  { %s51_s18 = smul.f32 %s71_s0, %s50_s1  ;;  %v54_v24 = vstv %s50_s1 }
  0xe3   :  { %s73_s19 = spop %72  ;;  %v55_v25 = vsub.f32 %v26_v2, %v54_v24  ;;  %v56_v26 = vsub.f32 %v27_v3, %v54_v24 }
  0xe4   :  { %s52_s20 = ssub.f32 %s73_s19, %s51_s18 }
  0xe6   :  { %s53_s21 = smul.f32 0.0004885198, %s52_s20 }
  0xe8   :  { %v57_v22 = vstv %s53_s21 }
  0xe9   :  { %77 = vrsqrt.f32 %v57_v22 }
  0xf3   :  { %v78_v23 = vpop.eup %77 }
  0xf4   :  { %74 = vpush %v78_v23 }
 0x125   :  { %s75_s22 = spop %74 }
 0x126   :  { %v60_v27 = vstv %s75_s22 }
 0x127   :  { %v61_v28 = vmul.f32 %v60_v27, %v55_v25  ;;  %v62_v29 = vmul.f32 %v60_v27, %v56_v26 }
 0x129   :  { %63 = vst [vmem:[%s126_s2] sm:$0xff] %v61_v28  ;;  %64 = vst [vmem:[%s126_s2 + $0x8] sm:$0xff] %v62_v29 }
 0x12a   :  { %69 = vsyncpa [#allocation3], 1 }

</bundles_post_ra>
